<compile_context>
chip_gen: v7x
topology: tpu7x:2x2x1
jax: 0.10.0
libtpu: 0.0.40
codegen_flags: <defaults>
</compile_context>

<pallas_src>
import functools

import jax
import jax.numpy as jnp
from jax.experimental import pallas as pl
from jax.experimental.pallas import tpu as pltpu

_LANES = 128
_OUT_BLOCK = (1, 8, _LANES)          # one dense (8,128) f32 block per grid step


def _triplet_tile_kernel(a_ref, p_ref, n_ref, out_ref, *, margin, seg_d, n_seg,
                         valid_rows):
    """One batch tile -> a single masked partial sum of per-row hinge losses.

    a/p/n blocks are (tile_rows, n_seg*seg_d); each physical row holds n_seg
    original embedding rows of length seg_d (lane folding for small D).
    """
    a = a_ref[...].astype(jnp.float32)
    p = p_ref[...].astype(jnp.float32)
    n = n_ref[...].astype(jnp.float32)

    # (a-p)^2 - (a-n)^2 == (p-n) * (p+n-2a): one elementwise pass + reduce.
    diff = (p - n) * (p + n - 2.0 * a)

    tile_rows = a_ref.shape[0]
    hinge = jnp.zeros((tile_rows, 1), jnp.float32)
    for k in range(n_seg):                                    # static, n_seg <= 8
        d_k = jnp.sum(diff[:, k * seg_d:(k + 1) * seg_d], axis=1, keepdims=True)
        hinge = hinge + jnp.maximum(d_k + jnp.float32(margin), 0.0)

    # Mask padded rows of the ragged last tile (out-of-bounds input rows hold
    # unspecified data and must not reach the partial sum).
    row0 = pl.program_id(0) * tile_rows
    rows = row0 + jax.lax.broadcasted_iota(jnp.int32, (tile_rows, 1), 0)
    hinge = jnp.where(rows < valid_rows, hinge, 0.0)

    tile_sum = jnp.sum(hinge, axis=0, keepdims=True)          # (1, 1)
    out_ref[...] = jnp.broadcast_to(tile_sum.reshape(1, 1, 1), _OUT_BLOCK)


def _vmem_limit_bytes():
    phys = 128 * 1024 * 1024
    try:
        info = pltpu.get_tpu_info()
        phys = int(getattr(info, "vmem_capacity_bytes", phys))
    except Exception:
        pass
    # 32 MiB scoped budget everywhere: raises v5e's 16 MiB default, matches
    # v6e/v7x defaults, and stays within v7x's 64 MiB physical per TC.
    return int(min(phys // 2, 32 * 1024 * 1024))


def _fold_factor(B, D):
    """Fold f rows into the lane dim when D << 128 (free wrapper reshape)."""
    if D >= _LANES:
        return 1
    f = min(_LANES // D, 8)
    if f <= 1 or B % f != 0:
        return 1
    return f


def _choose_tile_rows(rows, width, itemsize, vmem_limit):
    """Largest aligned batch tile fitting the streamed-input VMEM budget."""
    w_pad = ((width + _LANES - 1) // _LANES) * _LANES
    # 3 inputs x 2 pipeline buffers (input dtype) + ~4 tile-sized f32
    # temporaries (the in-kernel upcast + diff working set).
    per_row = 3 * 2 * w_pad * itemsize + 4 * w_pad * 4
    budget = (vmem_limit * 3) // 4
    tile = budget // per_row
    tile = min(tile, 4096)           # ~2 MiB/input/step already saturates HBM
    align = 16 if itemsize <= 2 else 8
    if rows > align:
        # Keep >= 2 grid steps so both v7x TensorCores get work.
        half = max(align, (((rows + 1) // 2) // align) * align)
        tile = min(tile, half)
    tile = max(align, (tile // align) * align)
    if tile >= rows:
        return rows
    return tile
    # TODO(synk): chunk the D axis in-kernel for pathologically large D where
    # even an 8-row tile exceeds the VMEM budget.


def make_triplet_loss(margin: float, size_average: bool = True,
                      tile_rows: int | None = None):
    """Returns a callable (anchor, positive, negative) -> scalar loss."""

    def fn(anchor, positive, negative):
        B, D = anchor.shape
        itemsize = jnp.dtype(anchor.dtype).itemsize
        f = _fold_factor(B, D)
        rows, width = B // f, f * D
        if f > 1:
            anchor_f = anchor.reshape(rows, width)
            positive_f = positive.reshape(rows, width)
            negative_f = negative.reshape(rows, width)
        else:
            anchor_f, positive_f, negative_f = anchor, positive, negative

        vmem_limit = _vmem_limit_bytes()
        tb = tile_rows if tile_rows is not None else _choose_tile_rows(
            rows, width, itemsize, vmem_limit)
        tb = min(tb, rows)
        num_tiles = pl.cdiv(rows, tb)

        kernel = functools.partial(
            _triplet_tile_kernel, margin=float(margin), seg_d=D, n_seg=f,
            valid_rows=rows)

        cost = pl.CostEstimate(
            flops=6 * B * D,
            transcendentals=0,
            bytes_accessed=3 * B * D * itemsize + num_tiles * 8 * _LANES * 4)

        partial = pl.pallas_call(
            kernel,
            out_shape=jax.ShapeDtypeStruct((num_tiles, 8, _LANES), jnp.float32),
            grid=(num_tiles,),
            in_specs=[
                pl.BlockSpec((tb, width), lambda i: (i, 0)),
                pl.BlockSpec((tb, width), lambda i: (i, 0)),
                pl.BlockSpec((tb, width), lambda i: (i, 0)),
            ],
            out_specs=pl.BlockSpec(_OUT_BLOCK, lambda i: (i, 0, 0)),
            compiler_params=pltpu.CompilerParams(
                dimension_semantics=("parallel",),
                vmem_limit_bytes=vmem_limit,
            ),
            cost_estimate=cost,
        )(anchor_f, positive_f, negative_f)

        total = jnp.sum(partial[:, 0, 0])
        return total / B if size_average else total

    return fn


def triplet_loss_ref(anchor, positive, negative, margin, size_average=True):
    a = anchor.astype(jnp.float32)
    p = positive.astype(jnp.float32)
    n = negative.astype(jnp.float32)
    dp = jnp.sum((a - p) ** 2, axis=1)
    dn = jnp.sum((a - n) ** 2, axis=1)
    losses = jnp.maximum(dp - dn + margin, 0.0)
    return jnp.mean(losses) if size_average else jnp.sum(losses)


if __name__ == "__main__":
    margin = 1.0
    keys = jax.random.split(jax.random.PRNGKey(0), 12)

    # 1) Small folded case (B=8, D=32 -> folded to (2, 128)); mean and sum.
    B, D = 8, 32
    a = jax.random.normal(keys[0], (B, D), dtype=jnp.float32)
    p = jax.random.normal(keys[1], (B, D), dtype=jnp.float32)
    n = jax.random.normal(keys[2], (B, D), dtype=jnp.float32)
    loss = jax.block_until_ready(make_triplet_loss(margin, True)(a, p, n))
    ref = triplet_loss_ref(a, p, n, margin, True)
    assert jnp.allclose(loss, ref, atol=1e-4, rtol=1e-5), (loss, ref)
    loss_s = jax.block_until_ready(make_triplet_loss(margin, False)(a, p, n))
    ref_s = triplet_loss_ref(a, p, n, margin, False)
    assert jnp.allclose(loss_s, ref_s, atol=1e-4, rtol=1e-5), (loss_s, ref_s)

    # 2) Folded multi-tile grid with a ragged last tile (rows=24, tile=16).
    B2, D2 = 96, 32
    a2 = jax.random.normal(keys[3], (B2, D2), dtype=jnp.float32)
    p2 = jax.random.normal(keys[4], (B2, D2), dtype=jnp.float32)
    n2 = jax.random.normal(keys[5], (B2, D2), dtype=jnp.float32)
    loss2 = jax.block_until_ready(
        make_triplet_loss(margin, True, tile_rows=16)(a2, p2, n2))
    ref2 = triplet_loss_ref(a2, p2, n2, margin, True)
    assert jnp.allclose(loss2, ref2, atol=1e-4, rtol=1e-5), (loss2, ref2)

    # 3) Unfolded (D > 128) ragged grid, sum reduction.
    B3, D3 = 20, 160
    a3 = jax.random.normal(keys[6], (B3, D3), dtype=jnp.float32)
    p3 = jax.random.normal(keys[7], (B3, D3), dtype=jnp.float32)
    n3 = jax.random.normal(keys[8], (B3, D3), dtype=jnp.float32)
    loss3 = jax.block_until_ready(
        make_triplet_loss(margin, False, tile_rows=8)(a3, p3, n3))
    ref3 = triplet_loss_ref(a3, p3, n3, margin, False)
    assert jnp.allclose(loss3, ref3, atol=1e-3, rtol=1e-4), (loss3, ref3)

    # 4) bf16 inputs, auto tile (exercises the >=2-step cap + ragged masking).
    B4, D4 = 24, 160
    a4 = jax.random.normal(keys[9], (B4, D4), dtype=jnp.bfloat16)
    p4 = jax.random.normal(keys[10], (B4, D4), dtype=jnp.bfloat16)
    n4 = jax.random.normal(keys[11], (B4, D4), dtype=jnp.bfloat16)
    loss4 = jax.block_until_ready(make_triplet_loss(margin, True)(a4, p4, n4))
    ref4 = triplet_loss_ref(a4, p4, n4, margin, True)
    assert jnp.allclose(loss4, ref4, atol=1e-2, rtol=1e-3), (loss4, ref4)

    print("KERNEL_OK")
</pallas_src>

<mosaic_0001>
module attributes {stable_mosaic.version = 11 : i64} {
  func.func @_triplet_tile_kernel(%arg0: i32, %arg1: memref<2x128xf32, #tpu.memory_space<vmem>>, %arg2: memref<2x128xf32, #tpu.memory_space<vmem>>, %arg3: memref<2x128xf32, #tpu.memory_space<vmem>>, %arg4: memref<1x8x128xf32, #tpu.memory_space<vmem>>) attributes {dimension_semantics = [#tpu.dimension_semantics<parallel>], iteration_bounds = array<i64: 1>, scalar_prefetch = 0 : i64, scratch_operands = 0 : i64, tpu.core_type = #tpu.core_type<tc>, window_params = [{transform_indices = @transform_0, window_bounds = array<i64: 2, 128>}, {transform_indices = @transform_1, window_bounds = array<i64: 2, 128>}, {transform_indices = @transform_2, window_bounds = array<i64: 2, 128>}, {transform_indices = @transform_3, window_bounds = array<i64: 1, 8, 128>}]} {
    %c0 = arith.constant 0 : index
    %c0_0 = arith.constant 0 : index
    %0 = vector.load %arg1[%c0, %c0_0] : memref<2x128xf32, #tpu.memory_space<vmem>>, vector<2x128xf32>
    %c0_1 = arith.constant 0 : index
    %c0_2 = arith.constant 0 : index
    %1 = vector.load %arg2[%c0_1, %c0_2] : memref<2x128xf32, #tpu.memory_space<vmem>>, vector<2x128xf32>
    %c0_3 = arith.constant 0 : index
    %c0_4 = arith.constant 0 : index
    %2 = vector.load %arg3[%c0_3, %c0_4] : memref<2x128xf32, #tpu.memory_space<vmem>>, vector<2x128xf32>
    %3 = arith.subf %1, %2 : vector<2x128xf32>
    %4 = arith.addf %1, %2 : vector<2x128xf32>
    %cst = arith.constant 2.000000e+00 : f32
    %5 = vector.broadcast %cst : f32 to vector<2x128xf32>
    %6 = arith.mulf %5, %0 : vector<2x128xf32>
    %7 = arith.subf %4, %6 : vector<2x128xf32>
    %8 = arith.mulf %3, %7 : vector<2x128xf32>
    %cst_5 = arith.constant 0.000000e+00 : f32
    %9 = vector.broadcast %cst_5 : f32 to vector<2x1xf32>
    %10 = vector.extract_strided_slice %8 {offsets = [0, 0], sizes = [2, 32], strides = [1, 1]} : vector<2x128xf32> to vector<2x32xf32>
    %cst_6 = arith.constant dense<0.000000e+00> : vector<2xf32>
    %11 = vector.multi_reduction <add>, %10, %cst_6 [1] : vector<2x32xf32> to vector<2xf32>
    %12 = vector.shape_cast %11 : vector<2xf32> to vector<2x1xf32>
    %cst_7 = arith.constant 1.000000e+00 : f32
    %13 = vector.broadcast %cst_7 : f32 to vector<2x1xf32>
    %14 = arith.addf %12, %13 : vector<2x1xf32>
    %cst_8 = arith.constant 0.000000e+00 : f32
    %15 = vector.broadcast %cst_8 : f32 to vector<2x1xf32>
    %16 = arith.maximumf %14, %15 : vector<2x1xf32>
    %17 = arith.addf %9, %16 : vector<2x1xf32>
    %18 = vector.extract_strided_slice %8 {offsets = [0, 32], sizes = [2, 32], strides = [1, 1]} : vector<2x128xf32> to vector<2x32xf32>
    %cst_9 = arith.constant dense<0.000000e+00> : vector<2xf32>
    %19 = vector.multi_reduction <add>, %18, %cst_9 [1] : vector<2x32xf32> to vector<2xf32>
    %20 = vector.shape_cast %19 : vector<2xf32> to vector<2x1xf32>
    %cst_10 = arith.constant 1.000000e+00 : f32
    %21 = vector.broadcast %cst_10 : f32 to vector<2x1xf32>
    %22 = arith.addf %20, %21 : vector<2x1xf32>
    %cst_11 = arith.constant 0.000000e+00 : f32
    %23 = vector.broadcast %cst_11 : f32 to vector<2x1xf32>
    %24 = arith.maximumf %22, %23 : vector<2x1xf32>
    %25 = arith.addf %17, %24 : vector<2x1xf32>
    %26 = vector.extract_strided_slice %8 {offsets = [0, 64], sizes = [2, 32], strides = [1, 1]} : vector<2x128xf32> to vector<2x32xf32>
    %cst_12 = arith.constant dense<0.000000e+00> : vector<2xf32>
    %27 = vector.multi_reduction <add>, %26, %cst_12 [1] : vector<2x32xf32> to vector<2xf32>
    %28 = vector.shape_cast %27 : vector<2xf32> to vector<2x1xf32>
    %cst_13 = arith.constant 1.000000e+00 : f32
    %29 = vector.broadcast %cst_13 : f32 to vector<2x1xf32>
    %30 = arith.addf %28, %29 : vector<2x1xf32>
    %cst_14 = arith.constant 0.000000e+00 : f32
    %31 = vector.broadcast %cst_14 : f32 to vector<2x1xf32>
    %32 = arith.maximumf %30, %31 : vector<2x1xf32>
    %33 = arith.addf %25, %32 : vector<2x1xf32>
    %34 = vector.extract_strided_slice %8 {offsets = [0, 96], sizes = [2, 32], strides = [1, 1]} : vector<2x128xf32> to vector<2x32xf32>
    %cst_15 = arith.constant dense<0.000000e+00> : vector<2xf32>
    %35 = vector.multi_reduction <add>, %34, %cst_15 [1] : vector<2x32xf32> to vector<2xf32>
    %36 = vector.shape_cast %35 : vector<2xf32> to vector<2x1xf32>
    %cst_16 = arith.constant 1.000000e+00 : f32
    %37 = vector.broadcast %cst_16 : f32 to vector<2x1xf32>
    %38 = arith.addf %36, %37 : vector<2x1xf32>
    %cst_17 = arith.constant 0.000000e+00 : f32
    %39 = vector.broadcast %cst_17 : f32 to vector<2x1xf32>
    %40 = arith.maximumf %38, %39 : vector<2x1xf32>
    %41 = arith.addf %33, %40 : vector<2x1xf32>
    %c2_i32 = arith.constant 2 : i32
    %42 = arith.muli %arg0, %c2_i32 : i32
    %43 = tpu.iota {dimensions = array<i32: 0>} : vector<2x1xi32>
    %44 = vector.broadcast %42 : i32 to vector<2x1xi32>
    %45 = arith.addi %44, %43 : vector<2x1xi32>
    %c2_i32_18 = arith.constant 2 : i32
    %46 = vector.broadcast %c2_i32_18 : i32 to vector<2x1xi32>
    %47 = arith.cmpi slt, %45, %46 : vector<2x1xi32>
    %cst_19 = arith.constant 0.000000e+00 : f32
    %48 = vector.broadcast %cst_19 : f32 to vector<2x1xf32>
    %49 = arith.select %47, %41, %48 : vector<2x1xi1>, vector<2x1xf32>
    %cst_20 = arith.constant dense<0.000000e+00> : vector<1xf32>
    %50 = vector.multi_reduction <add>, %49, %cst_20 [0] : vector<2x1xf32> to vector<1xf32>
    %51 = vector.shape_cast %50 : vector<1xf32> to vector<1x1xf32>
    %52 = vector.shape_cast %51 : vector<1x1xf32> to vector<1x1x1xf32>
    %53 = vector.shape_cast %52 : vector<1x1x1xf32> to vector<1x1x1xf32>
    %54 = vector.broadcast %53 : vector<1x1x1xf32> to vector<1x8x128xf32>
    %c0_21 = arith.constant 0 : index
    %c0_22 = arith.constant 0 : index
    %c0_23 = arith.constant 0 : index
    %55 = vector.load %arg4[%c0_21, %c0_22, %c0_23] : memref<1x8x128xf32, #tpu.memory_space<vmem>>, vector<1x8x128xf32>
    tpu.vector_store %arg4[%c0_21, %c0_22, %c0_23], %54 {strides = array<i32>} : memref<1x8x128xf32, #tpu.memory_space<vmem>>, vector<1x8x128xf32>,
    return
  }
  func.func @transform_0(%arg0: i32) -> (i32, i32) {
    %c0_i32 = arith.constant 0 : i32
    %c0_i32_0 = arith.constant 0 : i32
    return %arg0, %c0_i32 : i32, i32
  }
  func.func @transform_1(%arg0: i32) -> (i32, i32) {
    %c0_i32 = arith.constant 0 : i32
    %c0_i32_0 = arith.constant 0 : i32
    return %arg0, %c0_i32 : i32, i32
  }
  func.func @transform_2(%arg0: i32) -> (i32, i32) {
    %c0_i32 = arith.constant 0 : i32
    %c0_i32_0 = arith.constant 0 : i32
    return %arg0, %c0_i32 : i32, i32
  }
  func.func @transform_3(%arg0: i32) -> (i32, i32, i32) {
    %c0_i32 = arith.constant 0 : i32
    %c0_i32_0 = arith.constant 0 : i32
    %c0_i32_1 = arith.constant 0 : i32
    return %arg0, %c0_i32, %c0_i32_0 : i32, i32, i32
  }
}

</mosaic_0001>

<bundles_post_ra>
// kernel: tpu_custom_call.1
= control target key start
LH: loop header
LB: loop body
LE: loop exit
PB: predicated region body
PF: predicated region fallthrough
CT: control target
= control target key end

     0   :  { %8 = vsyncpa [#allocation3], 0  ;;  %s209_s0 = inlined_call_operand.hbm [shape: f32[2,128], index: 0, kind: input, shape index: {}]   ;;  %s210_s1 = inlined_call_operand.vmem [shape: f32[2,128], index: 1, kind: input, shape index: {}]   ;;  %s211_s2 = inlined_call_operand.vmem [shape: f32[2,128], index: 2, kind: input, shape index: {}]   ;;  %s212_s3 = inlined_call_operand.hbm [shape: f32[1,8,128], index: 3, kind: output, shape index: {}]  }
   0x1   :  { %9 = vsyncpa [#allocation4], 0  ;;  %s154_s12 = smov [#allocation2]   ;;  %s106_s16 = scalar_lea.hbm %s209_s0, 32 }
   0x2   :  { %s16_s13 = sshll.u32 %s154_s12, 4  ;;  %p107_p0 = scmp.ne.s32.totalorder %s209_s0, %s106_s16  ;;  %s17_s13 = int_to_ptr.vmem [resolvable:$true] %s16_s13 }
   0x3   :  { %p110_p1 = scmp.lt.u32.totalorder %s106_s16, %s209_s0 }
   0x5   :  { %p112_p2 = pnand %p110_p1, %p107_p0 }
   0x7   :  { %115 = shalt.err (!%p112_p2)
}
   0x8   :  { %s116_s21 = scalar_lea.vmem %s17_s13, 32  ;;  %p121_p4 = scmp.lt.s32.totalorder %s17_s13, %s17_s13 }
   0x9   :  { %p117_p3 = scmp.ne.s32.totalorder %s17_s13, %s116_s21  ;;  %p122_p5 = scmp.lt.s32.totalorder %s116_s21, %s116_s21 }
   0xb   :  { %p123_p6 = por %p122_p5, %p121_p4 }
   0xd   :  { %p124_p7 = pnand %p123_p6, %p117_p3 }
   0xf   :  { %127 = shalt.err (!%p124_p7)
}
  0x10   :  { %19 = dma.hbm_to_vmem [thread:$0]  %s209_s0, 32, %s17_s13, [#allocation3]  }
  0x11   :  { %150 = dma.done.wait [#allocation3], 32  }
  0x12   :  { %151 = vsyncadd [#allocation3], 4294967264  ;;  %v27_v0 = vld [vmem:[#allocation2] sm:$0x3]  ;;  %s155_s28 = smov 96   ;;  %s156_s29 = smov 32   ;;  %v71_v20 = vlaneseq }
  0x13   :  { %v28_v1 = vld [vmem:[%s210_s1] sm:$0x3]  ;;  %v32_v5 = vmul.f32 2.0, %v27_v0  ;;  %s157_s0 = smov 64   ;;  %vm35_vm0 = vcmask 254976   ;;  %vm77_vm2 = vcmask 1041408  }
  0x14   :  { %v29_v2 = vld [vmem:[%s211_s2] sm:$0x3]  ;;  %v72_v26 = vshrl.u32 %v71_v20, 7  ;;  %s158_s1 = smov [#allocation5]  }
  0x15   :  { %v30_v3 = vsub.f32 %v28_v1, %v29_v2  ;;  %v31_v4 = vadd.f32 %v29_v2, %v28_v1  ;;  %s92_s2 = sshll.u32 %s158_s1, 4  ;;  %s93_s2 = int_to_ptr.vmem [resolvable:$true] %s92_s2 }
  0x16   :  { %vm75_vm1 = vcmp.lt.s32.totalorder %v72_v26, 2  ;;  %s128_s30 = scalar_lea.vmem %s93_s2, 128  ;;  %p133_p9 = scmp.lt.s32.totalorder %s93_s2, %s93_s2 }
  0x17   :  { %v33_v6 = vsub.f32 %v31_v4, %v32_v5  ;;  %p129_p8 = scmp.ne.s32.totalorder %s93_s2, %s128_s30  ;;  %p134_p10 = scmp.lt.s32.totalorder %s128_s30, %s128_s30 }
  0x19   :  { %v34_v7 = vmul.f32 %v33_v6, %v30_v3  ;;  %p135_p11 = por %p134_p10, %p133_p9 }
  0x1b   :  { %43 = vrot.lane.b32.xlu0 %v34_v7, %s155_s28  ;;  %61 = vrot.lane.b32.xlu1 %v34_v7, %s156_s29  ;;  %v36_v8 = vsel %vm35_vm0, %v34_v7, 0.0  ;;  %p136_p12 = pnand %p135_p11, %p129_p8 }
  0x1f   :  { %52 = vrot.lane.b32.xlu0 %v34_v7, %s157_s0 }
  0x3f   :  { %37 = vadd.xlane.f32.xlu1 %v36_v8 }
  0x8d   :  { %v44_v9 = vpop.permute.xlu0 %43  ;;  %v62_v10 = vpop.permute.xlu1 %61 }
  0x8e   :  { %v46_v11 = vsel %vm35_vm0, %v44_v9, 0.0  ;;  %v64_v12 = vsel %vm35_vm0, %v62_v10, 0.0 }
  0x8f   :  { %47 = vadd.xlane.f32.xlu0 %v46_v11  ;;  %65 = vadd.xlane.f32.xlu1 %v64_v12 }
  0x91   :  { %v53_v13 = vpop.permute.xlu0 %52 }
  0x92   :  { %v55_v14 = vsel %vm35_vm0, %v53_v13, 0.0 }
  0x93   :  { %56 = vadd.xlane.f32.xlu0 %v55_v14 }
  0xcc   :  { %v38_v15 = vpop.xlane.xlu1 %37 }
  0xcd   :  { %v39_v16 = vadd.f32 1.0, %v38_v15 }
  0xcf   :  { %v40_v22 = vmax.f32 %v39_v16, 0.0 }
 0x11c   :  { %v48_v17 = vpop.xlane.xlu0 %47  ;;  %v66_v18 = vpop.xlane.xlu1 %65 }
 0x11d   :  { %v49_v19 = vadd.f32 1.0, %v48_v17  ;;  %v67_v23 = vadd.f32 1.0, %v66_v18 }
 0x11f   :  { %v50_v21 = vmax.f32 %v49_v19, 0.0  ;;  %v68_v29 = vmax.f32 %v67_v23, 0.0 }
 0x120   :  { %v57_v24 = vpop.xlane.xlu0 %56 }
 0x121   :  { %v58_v25 = vadd.f32 1.0, %v57_v24  ;;  %v51_v27 = vadd.f32 %v50_v21, %v40_v22 }
 0x123   :  { %v59_v28 = vmax.f32 %v58_v25, 0.0 }
 0x125   :  { %v60_v30 = vadd.f32 %v59_v28, %v51_v27 }
 0x127   :  { %v69_v31 = vadd.f32 %v68_v29, %v60_v30 }
 0x129   :  { %v76_v32 = vsel %vm75_vm1, %v69_v31, 0.0 }
 0x12a   :  { %v78_v33 = vsel %vm77_vm2, %v76_v32, 0.0 }
 0x12b   :  { %v79_v34 = vrot.slane %v78_v33, 4 }
 0x12d   :  { %v80_v35 = vadd.f32 %v79_v34, %v78_v33 }
 0x12f   :  { %v81_v36 = vrot.slane %v80_v35, 2 }
 0x131   :  { %v82_v37 = vadd.f32 %v81_v36, %v80_v35 }
 0x133   :  { %v83_v38 = vrot.slane %v82_v37, 1 }
 0x135   :  { %v84_v39 = vadd.f32 %v83_v38, %v82_v37 }
 0x137   :  { %85 = vst [vmem:[#allocation5] sm:$0xff] %v84_v39 }
 0x138   :  { %139 = shalt.err (!%p136_p12)
}
 0x139   :  { %s140_s6 = scalar_lea.hbm %s212_s3, 128 }
 0x13a   :  { %p141_p13 = scmp.ne.s32.totalorder %s212_s3, %s140_s6  ;;  %p144_p0 = scmp.lt.u32.totalorder %s140_s6, %s212_s3 }
 0x13c   :  { %p146_p1 = pnand %p144_p0, %p141_p13 }
 0x13e   :  { %149 = shalt.err (!%p146_p1)
}
 0x13f   :  { %95 = dma.vmem_to_hbm [thread:$0]  %s93_s2, 128, %s212_s3, [#allocation4]  }
 0x140   :  { %152 = dma.done.wait [#allocation4], 128  }
 0x141   :  { %153 = vsyncadd [#allocation4], 4294967168 }
 0x142   :  { %99 = vsyncpa [#allocation3], 1 }
 0x143   :  { %100 = vsyncpa [#allocation4], 1 }

</bundles_post_ra>
